<compile_context>
chip_gen: v7x
topology: tpu7x:2x2x1
jax: 0.10.0
libtpu: 0.0.40
codegen_flags: <defaults>
</compile_context>

<pallas_src>
import jax
import jax.numpy as jnp
import numpy as np
from jax.experimental import pallas as pl
from jax.experimental.pallas import tpu as pltpu


def _round_up(x, m):
    return ((x + m - 1) // m) * m


def _choose_tm(n_rows, n_cols, max_tm=256):
    """Row-tile size: keep ~10 live (tm, n_cols) f32 strips under ~16 MiB so the
    kernel fits v7x's 64 MiB VMEM (and v5e's small scoped default) w/o spilling."""
    budget = 16 * 1024 * 1024
    per_row = 10 * 4 * max(n_cols, 1)
    cap = max(8, (budget // per_row) // 8 * 8)
    tm = min(max_tm, cap, _round_up(n_rows, 8))
    return max(8, (tm // 8) * 8)


def _vmem_limit_bytes():
    """Raise the scoped-VMEM limit above the 16/32 MiB defaults while leaving
    headroom below the physical capacity of the current TPU generation."""
    try:
        cap = pltpu.get_tpu_info().vmem_capacity_bytes
    except Exception:
        cap = 64 * 1024 * 1024  # assume the smallest (v7x per-TensorCore) capacity
    return int(cap * 3 // 4)


def _ephn_kernel(sigma, n_valid):
    """One grid step = one (tm, Nc) strip of the similarity matrix."""

    def kernel(lab_row_ref, lab_col_ref, row_ref, f_ref, ft_ref,
               pos_ref, neg_ref, vpos_ref, vneg_ref, prob_ref):
        f = f_ref[...]                       # (tm, D)  L2-normalized rows (LHS)
        ft = ft_ref[...]                     # (D, Nc)  L2-normalized, pre-transposed (RHS)
        lab_r = lab_row_ref[...]             # (1, Nc)  labels along lanes
        lab_c = lab_col_ref[...]             # (tm, 1)  labels along sublanes
        grow = row_ref[...]                  # (tm, 1)  global row indices
        tm = f.shape[0]
        nc = ft.shape[1]

        # Similarity strip; contraction (1,)x(0,) -> no in-kernel transpose.
        # TODO(synk): optionally cast f/ft to bfloat16 for ~3x MXU throughput at
        # large D (kept f32 to preserve 0.9999-threshold / argmax-tie semantics).
        dist = jax.lax.dot_general(
            f, ft, (((1,), (0,)), ((), ())),
            preferred_element_type=jnp.float32)          # (tm, nc)

        col = jax.lax.broadcasted_iota(jnp.int32, (tm, nc), 1)

        # distMC(sq=True): diagonal <- -1 (this is also the gather source).
        dist = jnp.where(col == grow, -1.0, dist)

        # Mask padded columns (only present when N is not a multiple of 128).
        if nc > n_valid:
            dist_v = jnp.where(col < n_valid, dist, -1.0)
        else:
            dist_v = dist

        same = lab_c == lab_r                            # (tm, nc); includes diag

        # ---- Easy positive: same label, not self, not "too easy" ----
        d_p = jnp.where(same, dist_v, -1.0)
        d_p = jnp.where(d_p > 0.9999, -1.0, d_p)         # also kills the diagonal
        v_pos = jnp.max(d_p, axis=1, keepdims=True)                      # (tm, 1)
        i_pos = jnp.min(jnp.where(d_p == v_pos, col, nc),
                        axis=1, keepdims=True)                           # first argmax
        pos = jnp.sum(jnp.where(col == i_pos, dist, 0.0),
                      axis=1, keepdims=True)                             # Dist[i, I_pos]

        # ---- Hard negative (semi == False): different label ----
        d_n = jnp.where(same, -1.0, dist_v)              # diag is Same -> -1
        v_neg = jnp.max(d_n, axis=1, keepdims=True)
        i_neg = jnp.min(jnp.where(d_n == v_neg, col, nc),
                        axis=1, keepdims=True)
        neg = jnp.sum(jnp.where(col == i_neg, dist, 0.0),
                      axis=1, keepdims=True)

        # Prob = -log_softmax([Pos, Neg] / sigma)[:, 0]   (per-row, O(tm))
        a = pos * (1.0 / sigma)
        b = neg * (1.0 / sigma)
        m = jnp.maximum(a, b)
        prob = (m + jnp.log(jnp.exp(a - m) + jnp.exp(b - m))) - a

        pos_ref[...] = pos
        neg_ref[...] = neg
        vpos_ref[...] = v_pos
        vneg_ref[...] = v_neg
        prob_ref[...] = prob

    return kernel


def ephn_loss(fvec, Lvec, sigma=0.1, max_block_rows=256):
    """Pallas implementation of EPHNLoss.forward (semi=False)."""
    fvec = jnp.asarray(fvec, jnp.float32)
    labels = jnp.asarray(Lvec, jnp.int32).reshape(-1)
    N, D = fvec.shape

    # F.normalize(fvec, p=2, dim=1) — done once, outside the per-block loop.
    nrm = jnp.sqrt(jnp.sum(fvec * fvec, axis=1, keepdims=True))
    fn = fvec / jnp.maximum(nrm, 1e-12)

    Nc = _round_up(N, 128)                     # lane (column) padding
    tm = _choose_tm(N, Nc, max_block_rows)     # row-block size (multiple of 8)
    Nr = _round_up(N, tm)                      # row padding
    grid = (Nr // tm,)

    fn_rows = jnp.zeros((Nr, D), jnp.float32).at[:N].set(fn)
    fn_t = jnp.zeros((D, Nc), jnp.float32).at[:, :N].set(fn.T)
    lab_row = jnp.full((1, Nc), -1, jnp.int32).at[0, :N].set(labels)
    lab_col = jnp.full((Nr, 1), -1, jnp.int32).at[:N, 0].set(labels)
    row_idx = jnp.arange(Nr, dtype=jnp.int32).reshape(Nr, 1)

    row_out = jax.ShapeDtypeStruct((Nr, 1), jnp.float32)
    grid_spec = pltpu.PrefetchScalarGridSpec(
        num_scalar_prefetch=0,
        grid=grid,
        in_specs=[
            pl.BlockSpec((1, Nc), lambda i: (0, 0)),   # labels along lanes (resident)
            pl.BlockSpec((tm, 1), lambda i: (i, 0)),   # labels along sublanes (blocked)
            pl.BlockSpec((tm, 1), lambda i: (i, 0)),   # global row indices (blocked)
            pl.BlockSpec((tm, D), lambda i: (i, 0)),   # normalized rows (LHS, blocked)
            pl.BlockSpec((D, Nc), lambda i: (0, 0)),   # normalized^T (RHS, resident)
        ],
        out_specs=tuple(pl.BlockSpec((tm, 1), lambda i: (i, 0)) for _ in range(5)),
    )

    pos, neg, v_pos, v_neg, prob = pl.pallas_call(
        _ephn_kernel(sigma, N),
        out_shape=(row_out,) * 5,
        grid_spec=grid_spec,
        compiler_params=pltpu.CompilerParams(
            dimension_semantics=("parallel",),         # shard row blocks (v7x: 2 TCs)
            vmem_limit_bytes=_vmem_limit_bytes(),
        ),
    )(lab_row, lab_col, row_idx, fn_rows, fn_t)

    pos = pos[:N, 0]
    neg = neg[:N, 0]
    v_pos = v_pos[:N, 0]
    v_neg = v_neg[:N, 0]
    prob = prob[:N, 0]

    # O(N) finalization kept outside the kernel so the grid axis is fully
    # parallel (no cross-block scalar accumulation needed).
    maskf = ((v_pos > 0.0) & (v_neg > 0.0)).astype(jnp.float32)
    loss = jnp.sum(prob * maskf) / jnp.sum(maskf)      # NaN if mask empty (== torch)
    pos_neg_difference = jnp.mean(pos) - jnp.mean(neg)

    # Variable-length outputs (data-dependent shapes) assembled eagerly outside
    # the kernel, matching torch.cat([Pos_log[V_pos > 0], Tensor([0, 1])]).
    extra = jnp.array([0.0, 1.0], jnp.float32)
    easy_positive_scores = jnp.concatenate([pos[v_pos > 0], extra], axis=0)
    hard_negative_scores = jnp.concatenate([neg[v_neg > 0], extra], axis=0)

    return loss, easy_positive_scores, hard_negative_scores, pos_neg_difference


def _ephn_reference(fvec, Lvec, sigma):
    """Pure-JAX mirror of the torch module, for an in-script sanity check."""
    fvec = jnp.asarray(fvec, jnp.float32)
    N = fvec.shape[0]
    fn = fvec / jnp.maximum(jnp.sqrt(jnp.sum(fvec * fvec, axis=1, keepdims=True)), 1e-12)
    dist = jnp.dot(fn, fn.T, precision=jax.lax.Precision.HIGHEST)
    dist = dist.at[jnp.arange(N), jnp.arange(N)].set(-1.0)
    same = Lvec[:, None] == Lvec[None, :]
    d_p = jnp.where(same, dist, -1.0)
    d_p = jnp.where(d_p > 0.9999, -1.0, d_p)
    v_pos = d_p.max(axis=1)
    pos = dist[jnp.arange(N), jnp.argmax(d_p, axis=1)]
    d_n = jnp.where(same, -1.0, dist)
    v_neg = d_n.max(axis=1)
    neg = dist[jnp.arange(N), jnp.argmax(d_n, axis=1)]
    t = jnp.stack([pos, neg], axis=1) / sigma
    prob = -jax.nn.log_softmax(t, axis=1)[:, 0]
    mask = (v_pos > 0.0) & (v_neg > 0.0)
    loss = jnp.sum(jnp.where(mask, prob, 0.0)) / jnp.sum(mask)
    pnd = pos.mean() - neg.mean()
    extra = jnp.array([0.0, 1.0], jnp.float32)
    easy = jnp.concatenate([pos[v_pos > 0], extra])
    hard = jnp.concatenate([neg[v_neg > 0], extra])
    return loss, easy, hard, pnd


if __name__ == "__main__":
    key = jax.random.PRNGKey(0)
    N, D = 8, 32
    fvec = jax.random.normal(key, (N, D), dtype=jnp.float32)
    Lvec = jnp.array([0, 0, 1, 1, 2, 2, 3, 3], dtype=jnp.int32)

    loss, easy, hard, pnd = ephn_loss(fvec, Lvec, sigma=0.1)
    jax.block_until_ready((loss, easy, hard, pnd))

    # Sanity check vs. the pure-JAX reference of the torch module.
    r_loss, r_easy, r_hard, r_pnd = _ephn_reference(fvec, Lvec, sigma=0.1)

    def _close(a, b):
        a = np.asarray(a)
        b = np.asarray(b)
        return a.shape == b.shape and np.allclose(a, b, rtol=2e-3, atol=2e-3, equal_nan=True)

    assert _close(loss, r_loss), (loss, r_loss)
    assert _close(pnd, r_pnd), (pnd, r_pnd)
    assert _close(easy, r_easy), (easy, r_easy)
    assert _close(hard, r_hard), (hard, r_hard)

    print("KERNEL_OK")
</pallas_src>

<mosaic_0001>
module attributes {stable_mosaic.version = 11 : i64} {
  func.func @kernel(%arg0: i32, %arg1: memref<1x128xi32, #tpu.memory_space<vmem>>, %arg2: memref<8x1xi32, #tpu.memory_space<vmem>>, %arg3: memref<8x1xi32, #tpu.memory_space<vmem>>, %arg4: memref<8x32xf32, #tpu.memory_space<vmem>>, %arg5: memref<32x128xf32, #tpu.memory_space<vmem>>, %arg6: memref<8x1xf32, #tpu.memory_space<vmem>>, %arg7: memref<8x1xf32, #tpu.memory_space<vmem>>, %arg8: memref<8x1xf32, #tpu.memory_space<vmem>>, %arg9: memref<8x1xf32, #tpu.memory_space<vmem>>, %arg10: memref<8x1xf32, #tpu.memory_space<vmem>>) attributes {dimension_semantics = [#tpu.dimension_semantics<parallel>], iteration_bounds = array<i64: 1>, scalar_prefetch = 0 : i64, scratch_operands = 0 : i64, tpu.core_type = #tpu.core_type<tc>, window_params = [{pipeline_mode = #tpu.pipeline_mode<synchronous>, transform_indices = @transform_0, window_bounds = array<i64: 1, 128>}, {transform_indices = @transform_1, window_bounds = array<i64: 8, 1>}, {transform_indices = @transform_2, window_bounds = array<i64: 8, 1>}, {transform_indices = @transform_3, window_bounds = array<i64: 8, 32>}, {pipeline_mode = #tpu.pipeline_mode<synchronous>, transform_indices = @transform_4, window_bounds = array<i64: 32, 128>}, {transform_indices = @transform_5, window_bounds = array<i64: 8, 1>}, {transform_indices = @transform_6, window_bounds = array<i64: 8, 1>}, {transform_indices = @transform_7, window_bounds = array<i64: 8, 1>}, {transform_indices = @transform_8, window_bounds = array<i64: 8, 1>}, {transform_indices = @transform_9, window_bounds = array<i64: 8, 1>}]} {
    %c0 = arith.constant 0 : index
    %c0_0 = arith.constant 0 : index
    %0 = vector.load %arg4[%c0, %c0_0] : memref<8x32xf32, #tpu.memory_space<vmem>>, vector<8x32xf32>
    %c0_1 = arith.constant 0 : index
    %c0_2 = arith.constant 0 : index
    %1 = vector.load %arg5[%c0_1, %c0_2] : memref<32x128xf32, #tpu.memory_space<vmem>>, vector<32x128xf32>
    %c0_3 = arith.constant 0 : index
    %c0_4 = arith.constant 0 : index
    %2 = vector.load %arg1[%c0_3, %c0_4] : memref<1x128xi32, #tpu.memory_space<vmem>>, vector<1x128xi32>
    %c0_5 = arith.constant 0 : index
    %c0_6 = arith.constant 0 : index
    %3 = vector.load %arg2[%c0_5, %c0_6] : memref<8x1xi32, #tpu.memory_space<vmem>>, vector<8x1xi32>
    %c0_7 = arith.constant 0 : index
    %c0_8 = arith.constant 0 : index
    %4 = vector.load %arg3[%c0_7, %c0_8] : memref<8x1xi32, #tpu.memory_space<vmem>>, vector<8x1xi32>
    %cst = arith.constant dense<0.000000e+00> : vector<8x128xf32>
    %5 = tpu.matmul %0, %1, %cst {dimension_numbers = #tpu.dot_dimension_numbers<[1], [0], [0], [1], [0, 0, 1, 1], [], []>} : vector<8x32xf32>, vector<32x128xf32>, vector<8x128xf32> -> vector<8x128xf32>
    %6 = tpu.iota {dimensions = array<i32: 1>} : vector<8x128xi32>
    %7 = vector.broadcast %4 : vector<8x1xi32> to vector<8x128xi32>
    %8 = arith.cmpi eq, %6, %7 : vector<8x128xi32>
    %cst_9 = arith.constant -1.000000e+00 : f32
    %9 = vector.broadcast %cst_9 : f32 to vector<8x128xf32>
    %10 = arith.select %8, %9, %5 : vector<8x128xi1>, vector<8x128xf32>
    %c8_i32 = arith.constant 8 : i32
    %11 = vector.broadcast %c8_i32 : i32 to vector<8x128xi32>
    %12 = arith.cmpi slt, %6, %11 : vector<8x128xi32>
    %cst_10 = arith.constant -1.000000e+00 : f32
    %13 = vector.broadcast %cst_10 : f32 to vector<8x128xf32>
    %14 = arith.select %12, %10, %13 : vector<8x128xi1>, vector<8x128xf32>
    %15 = vector.broadcast %3 : vector<8x1xi32> to vector<8x128xi32>
    %16 = vector.broadcast %2 : vector<1x128xi32> to vector<8x128xi32>
    %17 = arith.cmpi eq, %15, %16 : vector<8x128xi32>
    %cst_11 = arith.constant -1.000000e+00 : f32
    %18 = vector.broadcast %cst_11 : f32 to vector<8x128xf32>
    %19 = arith.select %17, %14, %18 : vector<8x128xi1>, vector<8x128xf32>
    %cst_12 = arith.constant 0.999899983 : f32
    %20 = vector.broadcast %cst_12 : f32 to vector<8x128xf32>
    %21 = arith.cmpf ogt, %19, %20 : vector<8x128xf32>
    %cst_13 = arith.constant -1.000000e+00 : f32
    %22 = vector.broadcast %cst_13 : f32 to vector<8x128xf32>
    %23 = arith.select %21, %22, %19 : vector<8x128xi1>, vector<8x128xf32>
    %cst_14 = arith.constant dense<0xFF800000> : vector<8xf32>
    %24 = vector.multi_reduction <maximumf>, %23, %cst_14 [1] : vector<8x128xf32> to vector<8xf32>
    %25 = vector.shape_cast %24 : vector<8xf32> to vector<8x1xf32>
    %26 = vector.broadcast %25 : vector<8x1xf32> to vector<8x128xf32>
    %27 = arith.cmpf oeq, %23, %26 : vector<8x128xf32>
    %c128_i32 = arith.constant 128 : i32
    %28 = vector.broadcast %c128_i32 : i32 to vector<8x128xi32>
    %29 = arith.select %27, %6, %28 : vector<8x128xi1>, vector<8x128xi32>
    %cst_15 = arith.constant dense<2147483647> : vector<8xi32>
    %30 = vector.multi_reduction <minsi>, %29, %cst_15 [1] : vector<8x128xi32> to vector<8xi32>
    %31 = vector.shape_cast %30 : vector<8xi32> to vector<8x1xi32>
    %32 = vector.broadcast %31 : vector<8x1xi32> to vector<8x128xi32>
    %33 = arith.cmpi eq, %6, %32 : vector<8x128xi32>
    %cst_16 = arith.constant 0.000000e+00 : f32
    %34 = vector.broadcast %cst_16 : f32 to vector<8x128xf32>
    %35 = arith.select %33, %10, %34 : vector<8x128xi1>, vector<8x128xf32>
    %cst_17 = arith.constant dense<0.000000e+00> : vector<8xf32>
    %36 = vector.multi_reduction <add>, %35, %cst_17 [1] : vector<8x128xf32> to vector<8xf32>
    %37 = vector.shape_cast %36 : vector<8xf32> to vector<8x1xf32>
    %cst_18 = arith.constant -1.000000e+00 : f32
    %38 = vector.broadcast %cst_18 : f32 to vector<8x128xf32>
    %39 = arith.select %17, %38, %14 : vector<8x128xi1>, vector<8x128xf32>
    %cst_19 = arith.constant dense<0xFF800000> : vector<8xf32>
    %40 = vector.multi_reduction <maximumf>, %39, %cst_19 [1] : vector<8x128xf32> to vector<8xf32>
    %41 = vector.shape_cast %40 : vector<8xf32> to vector<8x1xf32>
    %42 = vector.broadcast %41 : vector<8x1xf32> to vector<8x128xf32>
    %43 = arith.cmpf oeq, %39, %42 : vector<8x128xf32>
    %c128_i32_20 = arith.constant 128 : i32
    %44 = vector.broadcast %c128_i32_20 : i32 to vector<8x128xi32>
    %45 = arith.select %43, %6, %44 : vector<8x128xi1>, vector<8x128xi32>
    %cst_21 = arith.constant dense<2147483647> : vector<8xi32>
    %46 = vector.multi_reduction <minsi>, %45, %cst_21 [1] : vector<8x128xi32> to vector<8xi32>
    %47 = vector.shape_cast %46 : vector<8xi32> to vector<8x1xi32>
    %48 = vector.broadcast %47 : vector<8x1xi32> to vector<8x128xi32>
    %49 = arith.cmpi eq, %6, %48 : vector<8x128xi32>
    %cst_22 = arith.constant 0.000000e+00 : f32
    %50 = vector.broadcast %cst_22 : f32 to vector<8x128xf32>
    %51 = arith.select %49, %10, %50 : vector<8x128xi1>, vector<8x128xf32>
    %cst_23 = arith.constant dense<0.000000e+00> : vector<8xf32>
    %52 = vector.multi_reduction <add>, %51, %cst_23 [1] : vector<8x128xf32> to vector<8xf32>
    %53 = vector.shape_cast %52 : vector<8xf32> to vector<8x1xf32>
    %cst_24 = arith.constant 1.000000e+01 : f32
    %54 = vector.broadcast %cst_24 : f32 to vector<8x1xf32>
    %55 = arith.mulf %37, %54 : vector<8x1xf32>
    %cst_25 = arith.constant 1.000000e+01 : f32
    %56 = vector.broadcast %cst_25 : f32 to vector<8x1xf32>
    %57 = arith.mulf %53, %56 : vector<8x1xf32>
    %58 = arith.maximumf %55, %57 : vector<8x1xf32>
    %59 = arith.subf %55, %58 : vector<8x1xf32>
    %60 = math.exp %59 : vector<8x1xf32>
    %61 = arith.subf %57, %58 : vector<8x1xf32>
    %62 = math.exp %61 : vector<8x1xf32>
    %63 = arith.addf %60, %62 : vector<8x1xf32>
    %64 = math.log %63 : vector<8x1xf32>
    %65 = arith.addf %58, %64 : vector<8x1xf32>
    %66 = arith.subf %65, %55 : vector<8x1xf32>
    %c0_26 = arith.constant 0 : index
    %c0_27 = arith.constant 0 : index
    %67 = vector.load %arg6[%c0_26, %c0_27] : memref<8x1xf32, #tpu.memory_space<vmem>>, vector<8x1xf32>
    tpu.vector_store %arg6[%c0_26, %c0_27], %37 {strides = array<i32>} : memref<8x1xf32, #tpu.memory_space<vmem>>, vector<8x1xf32>,
    %c0_28 = arith.constant 0 : index
    %c0_29 = arith.constant 0 : index
    %68 = vector.load %arg7[%c0_28, %c0_29] : memref<8x1xf32, #tpu.memory_space<vmem>>, vector<8x1xf32>
    tpu.vector_store %arg7[%c0_28, %c0_29], %53 {strides = array<i32>} : memref<8x1xf32, #tpu.memory_space<vmem>>, vector<8x1xf32>,
    %c0_30 = arith.constant 0 : index
    %c0_31 = arith.constant 0 : index
    %69 = vector.load %arg8[%c0_30, %c0_31] : memref<8x1xf32, #tpu.memory_space<vmem>>, vector<8x1xf32>
    tpu.vector_store %arg8[%c0_30, %c0_31], %25 {strides = array<i32>} : memref<8x1xf32, #tpu.memory_space<vmem>>, vector<8x1xf32>,
    %c0_32 = arith.constant 0 : index
    %c0_33 = arith.constant 0 : index
    %70 = vector.load %arg9[%c0_32, %c0_33] : memref<8x1xf32, #tpu.memory_space<vmem>>, vector<8x1xf32>
    tpu.vector_store %arg9[%c0_32, %c0_33], %41 {strides = array<i32>} : memref<8x1xf32, #tpu.memory_space<vmem>>, vector<8x1xf32>,
    %c0_34 = arith.constant 0 : index
    %c0_35 = arith.constant 0 : index
    %71 = vector.load %arg10[%c0_34, %c0_35] : memref<8x1xf32, #tpu.memory_space<vmem>>, vector<8x1xf32>
    tpu.vector_store %arg10[%c0_34, %c0_35], %66 {strides = array<i32>} : memref<8x1xf32, #tpu.memory_space<vmem>>, vector<8x1xf32>,
    return
  }
  func.func @transform_0(%arg0: i32) -> (i32, i32) {
    %c0_i32 = arith.constant 0 : i32
    %c0_i32_0 = arith.constant 0 : i32
    %c0_i32_1 = arith.constant 0 : i32
    return %c0_i32, %c0_i32_0 : i32, i32
  }
  func.func @transform_1(%arg0: i32) -> (i32, i32) {
    %c0_i32 = arith.constant 0 : i32
    %c0_i32_0 = arith.constant 0 : i32
    return %arg0, %c0_i32 : i32, i32
  }
  func.func @transform_2(%arg0: i32) -> (i32, i32) {
    %c0_i32 = arith.constant 0 : i32
    %c0_i32_0 = arith.constant 0 : i32
    return %arg0, %c0_i32 : i32, i32
  }
  func.func @transform_3(%arg0: i32) -> (i32, i32) {
    %c0_i32 = arith.constant 0 : i32
    %c0_i32_0 = arith.constant 0 : i32
    return %arg0, %c0_i32 : i32, i32
  }
  func.func @transform_4(%arg0: i32) -> (i32, i32) {
    %c0_i32 = arith.constant 0 : i32
    %c0_i32_0 = arith.constant 0 : i32
    %c0_i32_1 = arith.constant 0 : i32
    return %c0_i32, %c0_i32_0 : i32, i32
  }
  func.func @transform_5(%arg0: i32) -> (i32, i32) {
    %c0_i32 = arith.constant 0 : i32
    %c0_i32_0 = arith.constant 0 : i32
    return %arg0, %c0_i32 : i32, i32
  }
  func.func @transform_6(%arg0: i32) -> (i32, i32) {
    %c0_i32 = arith.constant 0 : i32
    %c0_i32_0 = arith.constant 0 : i32
    return %arg0, %c0_i32 : i32, i32
  }
  func.func @transform_7(%arg0: i32) -> (i32, i32) {
    %c0_i32 = arith.constant 0 : i32
    %c0_i32_0 = arith.constant 0 : i32
    return %arg0, %c0_i32 : i32, i32
  }
  func.func @transform_8(%arg0: i32) -> (i32, i32) {
    %c0_i32 = arith.constant 0 : i32
    %c0_i32_0 = arith.constant 0 : i32
    return %arg0, %c0_i32 : i32, i32
  }
  func.func @transform_9(%arg0: i32) -> (i32, i32) {
    %c0_i32 = arith.constant 0 : i32
    %c0_i32_0 = arith.constant 0 : i32
    return %arg0, %c0_i32 : i32, i32
  }
}

</mosaic_0001>

<bundles_post_ra>
// kernel: tpu_custom_call.1
= control target key start
LH: loop header
LB: loop body
LE: loop exit
PB: predicated region body
PF: predicated region fallthrough
CT: control target
= control target key end

     0   :  { %15 = vsyncpa [#allocation3], 0  ;;  %s285_s30 = smov [#allocation2]   ;;  %s393_s0 = inlined_call_operand.vmem [shape: s32[1,128], index: 0, kind: input, shape index: {}]   ;;  %s394_s1 = inlined_call_operand.vmem [shape: s32[8,1], index: 1, kind: input, shape index: {}]   ;;  %s395_s2 = inlined_call_operand.vmem [shape: s32[8,1], index: 2, kind: input, shape index: {}]   ;;  %s396_s3 = inlined_call_operand.hbm [shape: f32[8,32], index: 3, kind: input, shape index: {}]   ;;  %s397_s4 = inlined_call_operand.vmem [shape: f32[32,128], index: 4, kind: input, shape index: {}]   ;;  %s398_s5 = inlined_call_operand.vmem [shape: f32[8,1], index: 5, kind: output, shape index: {0}]   ;;  %s399_s6 = inlined_call_operand.vmem [shape: f32[8,1], index: 6, kind: output, shape index: {1}]   ;;  %s400_s7 = inlined_call_operand.vmem [shape: f32[8,1], index: 7, kind: output, shape index: {2}]   ;;  %s401_s8 = inlined_call_operand.vmem [shape: f32[8,1], index: 8, kind: output, shape index: {3}]   ;;  %s402_s9 = inlined_call_operand.vmem [shape: f32[8,1], index: 9, kind: output, shape index: {4}]  }
   0x1   :  { %s28_s10 = sshll.u32 %s285_s30, 4  ;;  %s261_s13 = scalar_lea.hbm %s396_s3, 128  ;;  %s29_s10 = int_to_ptr.vmem [resolvable:$true] %s28_s10 }
   0x2   :  { %p262_p0 = scmp.ne.s32.totalorder %s396_s3, %s261_s13  ;;  %p265_p1 = scmp.lt.u32.totalorder %s261_s13, %s396_s3 }
   0x4   :  { %p267_p2 = pnand %p265_p1, %p262_p0 }
   0x6   :  { %270 = shalt.err (!%p267_p2)
}
   0x7   :  { %s271_s18 = scalar_lea.vmem %s29_s10, 128  ;;  %p276_p4 = scmp.lt.s32.totalorder %s29_s10, %s29_s10 }
   0x8   :  { %p272_p3 = scmp.ne.s32.totalorder %s29_s10, %s271_s18  ;;  %p277_p5 = scmp.lt.s32.totalorder %s271_s18, %s271_s18 }
   0xa   :  { %p278_p6 = por %p277_p5, %p276_p4 }
   0xc   :  { %p279_p7 = pnand %p278_p6, %p272_p3 }
   0xe   :  { %282 = shalt.err (!%p279_p7)
}
   0xf   :  { %31 = dma.hbm_to_vmem [thread:$0]  %s396_s3, 128, %s29_s10, [#allocation3]  }
  0x10   :  { %283 = dma.done.wait [#allocation3], 128  }
  0x11   :  { %284 = vsyncadd [#allocation3], 4294967168  ;;  %v286_v0 = vmov 0.0|0.0   ;;  %vm287_vm0 = vmmov 0   ;;  %v288_v1 = vmov 0.0   ;;  %v289_v2 = vmov 0  }
  0x12   :  { %243 = vmatprep.subr.bf16.mxu0 %v286_v0  ;;  %240 = vmatprep.mubr.msk.f32.mxu0 %vm287_vm0, %v288_v1  ;;  %v38_v3 = vld [vmem:[%s397_s4] sm:$0xff]  ;;  %v39_v4 = vld [vmem:[%s397_s4 + $0x8] sm:$0xff]  ;;  %v40_v5 = vld [vmem:[%s397_s4 + $0x10] sm:$0xff]  ;;  %vm45_vm1 = vcmask 261120   ;;  %v119_v12 = vlaneseq  ;;  %vm198_vm6 = vcmask 7168  }
  0x13   :  { %254 = vset.pattern.permute.xlu0 %v289_v2  ;;  %v244_v6 = vpack.c.bf16 %v39_v4, %v38_v3  ;;  %v41_v7 = vld [vmem:[%s397_s4 + $0x18] sm:$0xff]  ;;  %v44_v8 = vld [vmem:[%s395_s2] sm:$0xff] }
  0x14   :  { %122 = vperm.xlu0 %254, %v44_v8   ;;  %v247_v9 = vpack.c.bf16 %v41_v7, %v40_v5  ;;  %v43_v10 = vld [vmem:[%s394_s1] sm:$0xff]  ;;  %v120_v14 = vand.u32 127, %v119_v12 }
  0x15   :  { %245 = vmatpush3.bf16.msra.mxu0 %v244_v6  ;;  %v37_v11 = vld [vmem:[#allocation2] sm:$0xff] }
  0x16   :  { %246 = vmatprep.subr.bf16.mxu0 %v286_v0  ;;  %v226_v16 = vld [vmem:[%s393_s0] ss:$0 sm:$0xff]  ;;  %vm126_vm2 = vcmp.lt.s32.totalorder %v120_v14, 8 }
  0x18   :  { %129 = vperm.xlu0 %254, %v43_v10  }
  0x19   :  { %248 = vmatpush3.bf16.msra.mxu0 %v247_v9 }
  0x1c   :  { %241 = vmatmul.mubr.msk.f32.vlgmr.msra.gmra.mrb[0].mxu0 %vm45_vm1, %v37_v11 }
  0x93   :  { %v123_v13 = vpop.permute.xlu0 %122 }
  0x94   :  { %vm124_vm3 = vcmp.eq.s32.totalorder %v120_v14, %v123_v13 }
  0x97   :  { %v130_v15 = vpop.permute.xlu0 %129 }
  0x98   :  { %vm135_vm4 = vcmp.eq.s32.totalorder %v130_v15, %v226_v16 }
  0xef   :  { %v115_v17 = vpop.f32.mrb[0].mxu0 }
  0xf0   :  { %v125_v18 = vsel %vm124_vm3, -1.0, %v115_v17  ;;  %v242_v19 = vpop.f32.mrb[1].mxu0 }
  0xf1   :  { %v127_v20 = vsel %vm126_vm2, %v125_v18, -1.0 }
  0xf2   :  { %v136_v21 = vsel %vm135_vm4, %v127_v20, -1.0  ;;  %v161_v23 = vsel %vm135_vm4, -1.0, %v127_v20 }
  0xf3   :  { %vm137_vm5 = vcmp.gt.f32.partialorder %v136_v21, 0.9999 }
  0xf4   :  { %v138_v22 = vsel %vm137_vm5, -1.0, %v136_v21 }
  0xf5   :  { %139 = vmax.xlane.f32.xlu1 %v138_v22 }
  0xf9   :  { %162 = vmax.xlane.f32.xlu1 %v161_v23 }
 0x182   :  { %v140_v24 = vpop.xlane.xlu1 %139 }
 0x183   :  { %vm141_vm7 = vcmp.eq.f32.partialorder %v138_v22, %v140_v24  ;;  %201 = vst.msk [vmem:[%s400_s7] sm:$0xff] %vm198_vm6, %v140_v24 }
 0x184   :  { %v142_v25 = vsel %vm141_vm7, %v120_v14, 128 }
 0x185   :  { %v144_v26 = vshra.s32 %v142_v25, 16  ;;  %v143_v32 = vand.u32 65535, %v142_v25 }
 0x186   :  { %v163_v27 = vpop.xlane.xlu1 %162 }
 0x187   :  { %vm164_vm8 = vcmp.eq.f32.partialorder %v161_v23, %v163_v27  ;;  %202 = vst.msk [vmem:[%s401_s8] sm:$0xff] %vm198_vm6, %v163_v27  ;;  %v146_v28 = vcvt.s32.f32 %v144_v26  ;;  %v145_v34 = vcvt.s32.f32 %v143_v32 }
 0x188   :  { %v165_v29 = vsel %vm164_vm8, %v120_v14, 128 }
 0x189   :  { %147 = vmin.xlane.f32.xlu0 %v146_v28  ;;  %v167_v30 = vshra.s32 %v165_v29, 16  ;;  %v166_v35 = vand.u32 65535, %v165_v29 }
 0x18b   :  { %v169_v31 = vcvt.s32.f32 %v167_v30  ;;  %v168_v38 = vcvt.s32.f32 %v166_v35 }
 0x18d   :  { %170 = vmin.xlane.f32.xlu1 %v169_v31 }
 0x216   :  { %v148_v33 = vpop.xlane.xlu0 %147 }
 0x217   :  { %vm149_vm9 = vcmp.eq.f32.partialorder %v146_v28, %v148_v33  ;;  %v154_v40 = vcvt.f32.s32 %v148_v33 }
 0x218   :  { %v150_v36 = vsel %vm149_vm9, %v145_v34, inf }
 0x219   :  { %151 = vmin.xlane.f32.xlu1 %v150_v36  ;;  %v155_v42 = vshll.u32 %v154_v40, 16 }
 0x21a   :  { %v171_v37 = vpop.xlane.xlu1 %170 }
 0x21b   :  { %vm172_vm10 = vcmp.eq.f32.partialorder %v169_v31, %v171_v37  ;;  %v177_v43 = vcvt.f32.s32 %v171_v37 }
 0x21c   :  { %v173_v39 = vsel %vm172_vm10, %v168_v38, inf }
 0x21d   :  { %174 = vmin.xlane.f32.xlu1 %v173_v39  ;;  %v178_v47 = vshll.u32 %v177_v43, 16 }
 0x2a6   :  { %v152_v41 = vpop.xlane.xlu1 %151 }
 0x2a7   :  { %v153_v44 = vcvt.f32.s32 %v152_v41 }
 0x2a9   :  { %v156_v45 = vadd.s32 %v155_v42, %v153_v44 }
 0x2aa   :  { %v175_v46 = vpop.xlane.xlu1 %174 }
 0x2ab   :  { %v176_v48 = vcvt.f32.s32 %v175_v46  ;;  %vm157_vm11 = vcmp.eq.s32.totalorder %v120_v14, %v156_v45 }
 0x2ac   :  { %v158_v49 = vsel %vm157_vm11, %v125_v18, 0.0 }
 0x2ad   :  { %v179_v50 = vadd.s32 %v178_v47, %v176_v48  ;;  %159 = vadd.xlane.f32.xlu1 %v158_v49 }
 0x2af   :  { %vm180_vm12 = vcmp.eq.s32.totalorder %v120_v14, %v179_v50 }
 0x2b0   :  { %v181_v51 = vsel %vm180_vm12, %v125_v18, 0.0 }
 0x2b1   :  { %182 = vadd.xlane.f32.xlu1 %v181_v51 }
 0x33a   :  { %v160_v52 = vpop.xlane.xlu1 %159 }
 0x33b   :  { %199 = vst.msk [vmem:[%s398_s5] sm:$0xff] %vm198_vm6, %v160_v52  ;;  %v184_v54 = vmul.f32 10.0, %v160_v52 }
 0x33e   :  { %v183_v53 = vpop.xlane.xlu1 %182 }
 0x33f   :  { %v185_v55 = vmul.f32 10.0, %v183_v53  ;;  %200 = vst.msk [vmem:[%s399_s6] sm:$0xff] %vm198_vm6, %v183_v53 }
 0x341   :  { %v186_v56 = vmax.f32 %v184_v54, %v185_v55 }
 0x343   :  { %v187_v57 = vsub.f32 %v184_v54, %v186_v56  ;;  %v190_v58 = vsub.f32 %v185_v55, %v186_v56 }
 0x345   :  { %v188_v59 = vmul.f32 1.442695, %v187_v57  ;;  %v191_v60 = vmul.f32 1.442695, %v190_v58 }
 0x347   :  { %255 = vpow2.f32 %v188_v59 }
 0x348   :  { %257 = vpow2.f32 %v191_v60 }
 0x351   :  { %v256_v61 = vpop.eup %255 }
 0x352   :  { %v258_v62 = vpop.eup %257 }
 0x353   :  { %v193_v63 = vadd.f32 %v258_v62, %v256_v61 }
 0x355   :  { %259 = vlog2.f32 %v193_v63 }
 0x35f   :  { %v260_v0 = vpop.eup %259 }
 0x360   :  { %v195_v1 = vmul.f32 0.6931472, %v260_v0 }
 0x362   :  { %v196_v2 = vadd.f32 %v195_v1, %v186_v56 }
 0x364   :  { %v197_v3 = vsub.f32 %v196_v2, %v184_v54 }
 0x366   :  { %203 = vst.msk [vmem:[%s402_s9] sm:$0xff] %vm198_vm6, %v197_v3 }
 0x367   :  { %224 = vsyncpa [#allocation3], 1 }

</bundles_post_ra>
